<compile_context>
chip_gen: v6e
topology: v6e:2x2x1
jax: 0.10.0
libtpu: 0.0.40
codegen_flags: <defaults>
</compile_context>

<pallas_src>
import functools

import jax
import jax.numpy as jnp
from jax.experimental import pallas as pl
from jax.experimental.pallas import tpu as pltpu

_LANE = 128
_SUBLANE = 8


def _round_up(v, m):
    return (v + m - 1) // m * m


def _pad_to(a, shape):
    return jnp.pad(a, [(0, s - d) for d, s in zip(a.shape, shape)])


# ----------------------------------------------------------------------------
# Pallas kernel factory: tiled GEMM + folded-BN affine (+ fused skip) (+ ReLU).
# Grid: (N, M_tiles, Cout_tiles, K_tiles); K is the reduction axis (innermost).
# ----------------------------------------------------------------------------
def _make_kernel(apply_relu: bool, skip_mode: str):
    def kernel(*refs):
        if skip_mode == "none":
            x_ref, w_ref, s_ref, b_ref, o_ref, acc_ref = refs
        elif skip_mode == "add":
            x_ref, w_ref, s_ref, b_ref, r_ref, o_ref, acc_ref = refs
        else:  # "conv": fused 1x1-conv + BN skip path
            (x_ref, w_ref, s_ref, b_ref,
             sx_ref, sw_ref, ss_ref, sb_ref, o_ref, acc_ref) = refs

        k = pl.program_id(3)

        @pl.when(k == 0)
        def _init():
            acc_ref[...] = jnp.zeros_like(acc_ref)

        acc_ref[...] += jnp.dot(x_ref[...], w_ref[...],
                                preferred_element_type=jnp.float32)

        @pl.when(k == pl.num_programs(3) - 1)
        def _epilogue():
            y = acc_ref[...] * s_ref[...] + b_ref[...]     # folded BN (+conv bias)
            if skip_mode == "add":
                y = y + r_ref[...]                         # identity skip
            elif skip_mode == "conv":
                r = jnp.dot(sx_ref[...], sw_ref[...],
                            preferred_element_type=jnp.float32)
                y = y + r * ss_ref[...] + sb_ref[...]      # 1x1-conv + BN skip
            if apply_relu:
                y = jnp.maximum(y, 0.0)
            o_ref[...] = y.astype(o_ref.dtype)

    return kernel


# ----------------------------------------------------------------------------
# Fused GEMM wrapper.
#   cols : (N, M, K)   activations (im2col patches)
#   w    : (K, Cout)   conv weights flattened
#   scale/bias : (Cout,) or (1, Cout)  folded BN (+conv bias)
#   skip : None
#        | ("add", residual (N, M, Cout))
#        | ("conv", sx (N, M, Cs), sw (Cs, Cout), sscale, sbias)
# Returns (N, M, Cout) in out_dtype.
# ----------------------------------------------------------------------------
def _fused_gemm(cols, w, scale, bias, *, relu=True, skip=None,
                out_dtype=jnp.float32):
    N, M, K = cols.shape
    Cout = w.shape[1]

    # Tile sizes: lane-dense (128-multiple) Cout/K, sublane-aligned M.
    K_pad = _round_up(K, _LANE)
    C_pad = _round_up(Cout, _LANE)
    TN = 256 if C_pad % 256 == 0 else 128
    TK = 512 if K_pad % 512 == 0 else (256 if K_pad % 256 == 0 else 128)
    TM = 256 if M >= 256 else _round_up(M, _SUBLANE)
    M_pad = _round_up(M, TM)

    x_p = _pad_to(cols.astype(jnp.bfloat16), (N, M_pad, K_pad))
    w_p = _pad_to(w.astype(jnp.bfloat16), (K_pad, C_pad))
    s_p = _pad_to(jnp.reshape(scale, (1, Cout)).astype(jnp.float32), (1, C_pad))
    b_p = _pad_to(jnp.reshape(bias, (1, Cout)).astype(jnp.float32), (1, C_pad))

    in_specs = [
        pl.BlockSpec((None, TM, TK), lambda n, i, j, k: (n, i, k)),
        pl.BlockSpec((TK, TN), lambda n, i, j, k: (k, j)),
        pl.BlockSpec((1, TN), lambda n, i, j, k: (0, j)),
        pl.BlockSpec((1, TN), lambda n, i, j, k: (0, j)),
    ]
    args = [x_p, w_p, s_p, b_p]
    out_itemsize = jnp.dtype(out_dtype).itemsize
    flops = 2 * N * M_pad * K_pad * C_pad
    bytes_accessed = (x_p.size * 2 + w_p.size * 2 + 2 * C_pad * 4
                      + N * M_pad * C_pad * out_itemsize)

    if skip is None:
        skip_mode = "none"
    elif skip[0] == "add":
        skip_mode = "add"
        r_p = _pad_to(skip[1].astype(jnp.float32), (N, M_pad, C_pad))
        in_specs.append(pl.BlockSpec((None, TM, TN), lambda n, i, j, k: (n, i, j)))
        args.append(r_p)
        bytes_accessed += r_p.size * 4
    else:
        skip_mode = "conv"
        _, sx, sw, ss, sb = skip
        Cs = sx.shape[-1]
        Cs_pad = _round_up(Cs, _LANE)
        sx_p = _pad_to(sx.astype(jnp.bfloat16), (N, M_pad, Cs_pad))
        sw_p = _pad_to(sw.astype(jnp.bfloat16), (Cs_pad, C_pad))
        ss_p = _pad_to(jnp.reshape(ss, (1, Cout)).astype(jnp.float32), (1, C_pad))
        sb_p = _pad_to(jnp.reshape(sb, (1, Cout)).astype(jnp.float32), (1, C_pad))
        in_specs += [
            pl.BlockSpec((None, TM, Cs_pad), lambda n, i, j, k: (n, i, 0)),
            pl.BlockSpec((Cs_pad, TN), lambda n, i, j, k: (0, j)),
            pl.BlockSpec((1, TN), lambda n, i, j, k: (0, j)),
            pl.BlockSpec((1, TN), lambda n, i, j, k: (0, j)),
        ]
        args += [sx_p, sw_p, ss_p, sb_p]
        flops += 2 * N * M_pad * Cs_pad * C_pad
        bytes_accessed += sx_p.size * 2 + sw_p.size * 2 + 2 * C_pad * 4

    grid = (N, M_pad // TM, C_pad // TN, K_pad // TK)

    out = pl.pallas_call(
        _make_kernel(relu, skip_mode),
        out_shape=jax.ShapeDtypeStruct((N, M_pad, C_pad), out_dtype),
        grid_spec=pltpu.PrefetchScalarGridSpec(
            num_scalar_prefetch=0,
            grid=grid,
            in_specs=in_specs,
            out_specs=pl.BlockSpec((None, TM, TN), lambda n, i, j, k: (n, i, j)),
            scratch_shapes=[pltpu.VMEM((TM, TN), jnp.float32)],
        ),
        compiler_params=pltpu.CompilerParams(
            dimension_semantics=("parallel", "parallel", "parallel", "arbitrary"),
            vmem_limit_bytes=48 * 1024 * 1024,
        ),
        cost_estimate=pl.CostEstimate(
            flops=flops, transcendentals=0, bytes_accessed=bytes_accessed),
    )(*args)

    return out[:, :M, :Cout]


# ----------------------------------------------------------------------------
# Glue: im2col for a 3x3 / pad=1 conv (weights reshaped to (9*Cin, Cout)).
# ----------------------------------------------------------------------------
def _im2col_3x3(x, stride):
    """x: (N, H, W, C) NHWC -> (N, Ho*Wo, 9*C), plus (Ho, Wo)."""
    N, H, W, C = x.shape
    Ho = (H + 2 - 3) // stride + 1
    Wo = (W + 2 - 3) // stride + 1
    xp = jnp.pad(x, ((0, 0), (1, 1), (1, 1), (0, 0)))
    cols = []
    for kh in range(3):
        for kw in range(3):
            cols.append(
                xp[:, kh:kh + Ho * stride:stride, kw:kw + Wo * stride:stride, :])
    patches = jnp.concatenate(cols, axis=-1)          # (N, Ho, Wo, 9*C)
    return patches.reshape(N, Ho * Wo, 9 * C), Ho, Wo


# ----------------------------------------------------------------------------
# ResidualBlock forward (NCHW in / NCHW out, like the PyTorch module).
# ----------------------------------------------------------------------------
def residual_block_forward(x_nchw, p, downsample):
    stride = 2 if downsample else 1
    x = jnp.transpose(x_nchw, (0, 2, 3, 1)).astype(jnp.float32)   # NHWC
    N, H, W, Cin = x.shape
    Cout = p["w1"].shape[-1]
    xb = x.astype(jnp.bfloat16)

    # Fold conv bias into BN bias: BN(conv(x)+cb) = scale*conv(x) + (bias + scale*cb).
    b1 = p["b1"] + p["s1"] * p["cb1"].reshape(1, -1)
    b2 = p["b2"] + p["s2"] * p["cb2"].reshape(1, -1)

    # ----- conv1 -> bn1 -> relu (bf16 intermediate, halves HBM round trip) -----
    cols1, Ho, Wo = _im2col_3x3(xb, stride)
    out1 = _fused_gemm(cols1, p["w1"].reshape(9 * Cin, Cout),
                       p["s1"], b1, relu=True, out_dtype=jnp.bfloat16)

    # ----- conv2 -> bn2 -> (+skip, fused in epilogue) -> relu -----
    cols2, _, _ = _im2col_3x3(out1.reshape(N, Ho, Wo, Cout), 1)
    if p["skip_w"] is not None:
        sbias = p["skip_bias"] + p["skip_scale"] * p["skip_cb"].reshape(1, -1)
        sx = xb[:, ::stride, ::stride, :].reshape(N, Ho * Wo, Cin)
        skip = ("conv", sx, p["skip_w"], p["skip_scale"], sbias)
    else:
        skip = ("add", x.reshape(N, H * W, Cin))
    out2 = _fused_gemm(cols2, p["w2"].reshape(9 * Cout, Cout),
                       p["s2"], b2, relu=True, skip=skip,
                       out_dtype=jnp.float32)

    out = out2.reshape(N, Ho, Wo, Cout)
    return jnp.transpose(out, (0, 3, 1, 2))                       # back to NCHW


# ----------------------------------------------------------------------------
# Deterministic parameter init (BN folded to scale/bias, eps = 1e-5).
# ----------------------------------------------------------------------------
def _fold_bn(key, c, eps=1e-5):
    k1, k2, k3, k4 = jax.random.split(key, 4)
    gamma = 1.0 + 0.1 * jax.random.normal(k1, (c,), jnp.float32)
    beta = 0.1 * jax.random.normal(k2, (c,), jnp.float32)
    running_mean = 0.1 * jax.random.normal(k3, (c,), jnp.float32)
    running_var = 1.0 + 0.1 * jax.random.uniform(k4, (c,), jnp.float32)
    scale = gamma / jnp.sqrt(running_var + eps)
    bias = beta - running_mean * scale
    return scale.reshape(1, c), bias.reshape(1, c)


def init_params(key, in_c, out_c, downsample):
    ks = jax.random.split(key, 9)
    p = {
        "w1": 0.1 * jax.random.normal(ks[0], (3, 3, in_c, out_c), jnp.float32),
        "cb1": 0.1 * jax.random.normal(ks[1], (out_c,), jnp.float32),
        "w2": 0.1 * jax.random.normal(ks[2], (3, 3, out_c, out_c), jnp.float32),
        "cb2": 0.1 * jax.random.normal(ks[3], (out_c,), jnp.float32),
    }
    p["s1"], p["b1"] = _fold_bn(ks[4], out_c)
    p["s2"], p["b2"] = _fold_bn(ks[5], out_c)
    if downsample or in_c != out_c:
        p["skip_w"] = 0.1 * jax.random.normal(ks[6], (in_c, out_c), jnp.float32)
        p["skip_cb"] = 0.1 * jax.random.normal(ks[7], (out_c,), jnp.float32)
        p["skip_scale"], p["skip_bias"] = _fold_bn(ks[8], out_c)
    else:
        p["skip_w"] = None
        p["skip_cb"] = None
        p["skip_scale"] = None
        p["skip_bias"] = None
    return p


# ----------------------------------------------------------------------------
# Pure-JAX reference (f32, for correctness check).
# ----------------------------------------------------------------------------
def reference_forward(x_nchw, p, downsample):
    stride = 2 if downsample else 1
    x = jnp.transpose(x_nchw, (0, 2, 3, 1)).astype(jnp.float32)

    def conv3x3(a, w, s):
        return jax.lax.conv_general_dilated(
            a, w, window_strides=(s, s), padding=((1, 1), (1, 1)),
            dimension_numbers=("NHWC", "HWIO", "NHWC"),
            precision=jax.lax.Precision.HIGHEST)

    if p["skip_w"] is not None:
        w_skip = p["skip_w"].reshape(1, 1, *p["skip_w"].shape)
        identity = jax.lax.conv_general_dilated(
            x, w_skip, window_strides=(stride, stride), padding="VALID",
            dimension_numbers=("NHWC", "HWIO", "NHWC"),
            precision=jax.lax.Precision.HIGHEST) + p["skip_cb"]
        identity = identity * p["skip_scale"] + p["skip_bias"]
    else:
        identity = x

    out = (conv3x3(x, p["w1"], stride) + p["cb1"]) * p["s1"] + p["b1"]
    out = jnp.maximum(out, 0.0)
    out = (conv3x3(out, p["w2"], 1) + p["cb2"]) * p["s2"] + p["b2"]
    out = jnp.maximum(out + identity, 0.0)
    return jnp.transpose(out, (0, 3, 1, 2))


# ----------------------------------------------------------------------------
if __name__ == "__main__":
    key = jax.random.PRNGKey(0)
    kx, kp = jax.random.split(key)

    N, Cin, H, W = 2, 4, 16, 16
    x = jax.random.normal(kx, (N, Cin, H, W), jnp.float32)

    configs = [
        (4, 8, False),   # in != out  -> conv skip, stride 1
        (4, 8, True),    # downsample -> conv skip, stride 2
        (4, 4, False),   # identity skip
    ]
    for in_c, out_c, down in configs:
        params = init_params(kp, in_c, out_c, down)
        fwd = jax.jit(functools.partial(residual_block_forward, downsample=down))
        out = fwd(x, params)
        out = jax.block_until_ready(out)
        ref = reference_forward(x, params, down)
        assert out.shape == ref.shape, (out.shape, ref.shape)
        # bf16 matmul inputs with f32 accumulation -> slightly relaxed tolerance.
        assert jnp.allclose(out, ref, atol=2e-2, rtol=2e-2), (
            f"mismatch for config {(in_c, out_c, down)}: "
            f"max abs err {float(jnp.max(jnp.abs(out - ref)))}")

    print("KERNEL_OK")
</pallas_src>

<mosaic_0001>
module attributes {stable_mosaic.version = 11 : i64} {
  func.func @kernel(%arg0: i32, %arg1: i32, %arg2: i32, %arg3: i32, %arg4: memref<1x256x128xbf16, #tpu.memory_space<vmem>>, %arg5: memref<128x128xbf16, #tpu.memory_space<vmem>>, %arg6: memref<1x128xf32, #tpu.memory_space<vmem>>, %arg7: memref<1x128xf32, #tpu.memory_space<vmem>>, %arg8: memref<1x256x128xbf16, #tpu.memory_space<vmem>>, %arg9: memref<256x128xf32, #tpu.memory_space<vmem>>) attributes {dimension_semantics = [#tpu.dimension_semantics<parallel>, #tpu.dimension_semantics<parallel>, #tpu.dimension_semantics<parallel>, #tpu.dimension_semantics<arbitrary>], iteration_bounds = array<i64: 2, 1, 1, 1>, scalar_prefetch = 0 : i64, scratch_operands = 1 : i64, tpu.core_type = #tpu.core_type<tc>, window_params = [{transform_indices = @transform_0, window_bounds = array<i64: 1, 256, 128>}, {transform_indices = @transform_1, window_bounds = array<i64: 128, 128>}, {transform_indices = @transform_2, window_bounds = array<i64: 1, 128>}, {transform_indices = @transform_3, window_bounds = array<i64: 1, 128>}, {transform_indices = @transform_4, window_bounds = array<i64: 1, 256, 128>}]} {
    %c0_i32 = arith.constant 0 : i32
    %0 = arith.cmpi eq, %arg3, %c0_i32 : i32
    %1 = arith.extui %0 : i1 to i32
    %c0_i32_0 = arith.constant 0 : i32
    %2 = arith.cmpi ne, %1, %c0_i32_0 : i32
    scf.if %2 {
      %cst_11 = arith.constant 0.000000e+00 : f32
      %13 = vector.broadcast %cst_11 : f32 to vector<256x128xf32>
      %c0_12 = arith.constant 0 : index
      %c0_13 = arith.constant 0 : index
      %14 = vector.load %arg9[%c0_12, %c0_13] : memref<256x128xf32, #tpu.memory_space<vmem>>, vector<256x128xf32>
      tpu.vector_store %arg9[%c0_12, %c0_13], %13 {strides = array<i32>} : memref<256x128xf32, #tpu.memory_space<vmem>>, vector<256x128xf32>,
    } else {
    }
    %c0 = arith.constant 0 : index
    %c0_1 = arith.constant 0 : index
    %3 = vector.load %arg9[%c0, %c0_1] : memref<256x128xf32, #tpu.memory_space<vmem>>, vector<256x128xf32>
    %c0_2 = arith.constant 0 : index
    %c0_3 = arith.constant 0 : index
    %c0_4 = arith.constant 0 : index
    %4 = vector.load %arg4[%c0_2, %c0_3, %c0_4] : memref<1x256x128xbf16, #tpu.memory_space<vmem>>, vector<1x256x128xbf16>
    %5 = vector.shape_cast %4 : vector<1x256x128xbf16> to vector<256x128xbf16>
    %c0_5 = arith.constant 0 : index
    %c0_6 = arith.constant 0 : index
    %6 = vector.load %arg5[%c0_5, %c0_6] : memref<128x128xbf16, #tpu.memory_space<vmem>>, vector<128x128xbf16>
    %cst = arith.constant dense<0.000000e+00> : vector<256x128xf32>
    %7 = tpu.matmul %5, %6, %cst {dimension_numbers = #tpu.dot_dimension_numbers<[1], [0], [0], [1], [0, 0, 1, 1], [], []>} : vector<256x128xbf16>, vector<128x128xbf16>, vector<256x128xf32> -> vector<256x128xf32>
    %8 = arith.addf %3, %7 : vector<256x128xf32>
    %c0_7 = arith.constant 0 : index
    %c0_8 = arith.constant 0 : index
    %9 = vector.load %arg9[%c0_7, %c0_8] : memref<256x128xf32, #tpu.memory_space<vmem>>, vector<256x128xf32>
    tpu.vector_store %arg9[%c0_7, %c0_8], %8 {strides = array<i32>} : memref<256x128xf32, #tpu.memory_space<vmem>>, vector<256x128xf32>,
    %c0_i32_9 = arith.constant 0 : i32
    %10 = arith.cmpi eq, %arg3, %c0_i32_9 : i32
    %11 = arith.extui %10 : i1 to i32
    %c0_i32_10 = arith.constant 0 : i32
    %12 = arith.cmpi ne, %11, %c0_i32_10 : i32
    scf.if %12 {
      %c0_11 = arith.constant 0 : index
      %c0_12 = arith.constant 0 : index
      %13 = vector.load %arg9[%c0_11, %c0_12] : memref<256x128xf32, #tpu.memory_space<vmem>>, vector<256x128xf32>
      %c0_13 = arith.constant 0 : index
      %c0_14 = arith.constant 0 : index
      %14 = vector.load %arg6[%c0_13, %c0_14] : memref<1x128xf32, #tpu.memory_space<vmem>>, vector<1x128xf32>
      %15 = vector.broadcast %14 : vector<1x128xf32> to vector<256x128xf32>
      %16 = arith.mulf %13, %15 : vector<256x128xf32>
      %c0_15 = arith.constant 0 : index
      %c0_16 = arith.constant 0 : index
      %17 = vector.load %arg7[%c0_15, %c0_16] : memref<1x128xf32, #tpu.memory_space<vmem>>, vector<1x128xf32>
      %18 = vector.broadcast %17 : vector<1x128xf32> to vector<256x128xf32>
      %19 = arith.addf %16, %18 : vector<256x128xf32>
      %cst_17 = arith.constant 0.000000e+00 : f32
      %20 = vector.broadcast %cst_17 : f32 to vector<256x128xf32>
      %21 = arith.maximumf %19, %20 : vector<256x128xf32>
      %22 = arith.truncf %21 : vector<256x128xf32> to vector<256x128xbf16>
      %c0_18 = arith.constant 0 : index
      %c0_19 = arith.constant 0 : index
      %c0_20 = arith.constant 0 : index
      %23 = vector.load %arg8[%c0_18, %c0_19, %c0_20] : memref<1x256x128xbf16, #tpu.memory_space<vmem>>, vector<1x256x128xbf16>
      %24 = vector.shape_cast %23 : vector<1x256x128xbf16> to vector<256x128xbf16>
      %25 = vector.shape_cast %22 : vector<256x128xbf16> to vector<1x256x128xbf16>
      tpu.vector_store %arg8[%c0_18, %c0_19, %c0_20], %25 {strides = array<i32>} : memref<1x256x128xbf16, #tpu.memory_space<vmem>>, vector<1x256x128xbf16>,
    } else {
    }
    return
  }
  func.func @transform_0(%arg0: i32, %arg1: i32, %arg2: i32, %arg3: i32) -> (i32, i32, i32) {
    %c0_i32 = arith.constant 0 : i32
    return %arg0, %arg1, %arg3 : i32, i32, i32
  }
  func.func @transform_1(%arg0: i32, %arg1: i32, %arg2: i32, %arg3: i32) -> (i32, i32) {
    %c0_i32 = arith.constant 0 : i32
    return %arg3, %arg2 : i32, i32
  }
  func.func @transform_2(%arg0: i32, %arg1: i32, %arg2: i32, %arg3: i32) -> (i32, i32) {
    %c0_i32 = arith.constant 0 : i32
    %c0_i32_0 = arith.constant 0 : i32
    return %c0_i32, %arg2 : i32, i32
  }
  func.func @transform_3(%arg0: i32, %arg1: i32, %arg2: i32, %arg3: i32) -> (i32, i32) {
    %c0_i32 = arith.constant 0 : i32
    %c0_i32_0 = arith.constant 0 : i32
    return %c0_i32, %arg2 : i32, i32
  }
  func.func @transform_4(%arg0: i32, %arg1: i32, %arg2: i32, %arg3: i32) -> (i32, i32, i32) {
    %c0_i32 = arith.constant 0 : i32
    return %arg0, %arg1, %arg2 : i32, i32, i32
  }
}

module attributes {stable_mosaic.version = 11 : i64} {
  func.func @kernel(%arg0: i32, %arg1: i32, %arg2: i32, %arg3: i32, %arg4: memref<1x256x128xbf16, #tpu.memory_space<vmem>>, %arg5: memref<128x128xbf16, #tpu.memory_space<vmem>>, %arg6: memref<1x128xf32, #tpu.memory_space<vmem>>, %arg7: memref<1x128xf32, #tpu.memory_space<vmem>>, %arg8: memref<1x256x128xbf16, #tpu.memory_space<vmem>>, %arg9: memref<128x128xbf16, #tpu.memory_space<vmem>>, %arg10: memref<1x128xf32, #tpu.memory_space<vmem>>, %arg11: memref<1x128xf32, #tpu.memory_space<vmem>>, %arg12: memref<1x256x128xf32, #tpu.memory_space<vmem>>, %arg13: memref<256x128xf32, #tpu.memory_space<vmem>>) attributes {dimension_semantics = [#tpu.dimension_semantics<parallel>, #tpu.dimension_semantics<parallel>, #tpu.dimension_semantics<parallel>, #tpu.dimension_semantics<arbitrary>], iteration_bounds = array<i64: 2, 1, 1, 1>, scalar_prefetch = 0 : i64, scratch_operands = 1 : i64, tpu.core_type = #tpu.core_type<tc>, window_params = [{transform_indices = @transform_0, window_bounds = array<i64: 1, 256, 128>}, {transform_indices = @transform_1, window_bounds = array<i64: 128, 128>}, {transform_indices = @transform_2, window_bounds = array<i64: 1, 128>}, {transform_indices = @transform_3, window_bounds = array<i64: 1, 128>}, {transform_indices = @transform_4, window_bounds = array<i64: 1, 256, 128>}, {transform_indices = @transform_5, window_bounds = array<i64: 128, 128>}, {transform_indices = @transform_6, window_bounds = array<i64: 1, 128>}, {transform_indices = @transform_7, window_bounds = array<i64: 1, 128>}, {transform_indices = @transform_8, window_bounds = array<i64: 1, 256, 128>}]} {
    %c0_i32 = arith.constant 0 : i32
    %0 = arith.cmpi eq, %arg3, %c0_i32 : i32
    %1 = arith.extui %0 : i1 to i32
    %c0_i32_0 = arith.constant 0 : i32
    %2 = arith.cmpi ne, %1, %c0_i32_0 : i32
    scf.if %2 {
      %cst_11 = arith.constant 0.000000e+00 : f32
      %13 = vector.broadcast %cst_11 : f32 to vector<256x128xf32>
      %c0_12 = arith.constant 0 : index
      %c0_13 = arith.constant 0 : index
      %14 = vector.load %arg13[%c0_12, %c0_13] : memref<256x128xf32, #tpu.memory_space<vmem>>, vector<256x128xf32>
      tpu.vector_store %arg13[%c0_12, %c0_13], %13 {strides = array<i32>} : memref<256x128xf32, #tpu.memory_space<vmem>>, vector<256x128xf32>,
    } else {
    }
    %c0 = arith.constant 0 : index
    %c0_1 = arith.constant 0 : index
    %3 = vector.load %arg13[%c0, %c0_1] : memref<256x128xf32, #tpu.memory_space<vmem>>, vector<256x128xf32>
    %c0_2 = arith.constant 0 : index
    %c0_3 = arith.constant 0 : index
    %c0_4 = arith.constant 0 : index
    %4 = vector.load %arg4[%c0_2, %c0_3, %c0_4] : memref<1x256x128xbf16, #tpu.memory_space<vmem>>, vector<1x256x128xbf16>
    %5 = vector.shape_cast %4 : vector<1x256x128xbf16> to vector<256x128xbf16>
    %c0_5 = arith.constant 0 : index
    %c0_6 = arith.constant 0 : index
    %6 = vector.load %arg5[%c0_5, %c0_6] : memref<128x128xbf16, #tpu.memory_space<vmem>>, vector<128x128xbf16>
    %cst = arith.constant dense<0.000000e+00> : vector<256x128xf32>
    %7 = tpu.matmul %5, %6, %cst {dimension_numbers = #tpu.dot_dimension_numbers<[1], [0], [0], [1], [0, 0, 1, 1], [], []>} : vector<256x128xbf16>, vector<128x128xbf16>, vector<256x128xf32> -> vector<256x128xf32>
    %8 = arith.addf %3, %7 : vector<256x128xf32>
    %c0_7 = arith.constant 0 : index
    %c0_8 = arith.constant 0 : index
    %9 = vector.load %arg13[%c0_7, %c0_8] : memref<256x128xf32, #tpu.memory_space<vmem>>, vector<256x128xf32>
    tpu.vector_store %arg13[%c0_7, %c0_8], %8 {strides = array<i32>} : memref<256x128xf32, #tpu.memory_space<vmem>>, vector<256x128xf32>,
    %c0_i32_9 = arith.constant 0 : i32
    %10 = arith.cmpi eq, %arg3, %c0_i32_9 : i32
    %11 = arith.extui %10 : i1 to i32
    %c0_i32_10 = arith.constant 0 : i32
    %12 = arith.cmpi ne, %11, %c0_i32_10 : i32
    scf.if %12 {
      %c0_11 = arith.constant 0 : index
      %c0_12 = arith.constant 0 : index
      %13 = vector.load %arg13[%c0_11, %c0_12] : memref<256x128xf32, #tpu.memory_space<vmem>>, vector<256x128xf32>
      %c0_13 = arith.constant 0 : index
      %c0_14 = arith.constant 0 : index
      %14 = vector.load %arg6[%c0_13, %c0_14] : memref<1x128xf32, #tpu.memory_space<vmem>>, vector<1x128xf32>
      %15 = vector.broadcast %14 : vector<1x128xf32> to vector<256x128xf32>
      %16 = arith.mulf %13, %15 : vector<256x128xf32>
      %c0_15 = arith.constant 0 : index
      %c0_16 = arith.constant 0 : index
      %17 = vector.load %arg7[%c0_15, %c0_16] : memref<1x128xf32, #tpu.memory_space<vmem>>, vector<1x128xf32>
      %18 = vector.broadcast %17 : vector<1x128xf32> to vector<256x128xf32>
      %19 = arith.addf %16, %18 : vector<256x128xf32>
      %c0_17 = arith.constant 0 : index
      %c0_18 = arith.constant 0 : index
      %c0_19 = arith.constant 0 : index
      %20 = vector.load %arg8[%c0_17, %c0_18, %c0_19] : memref<1x256x128xbf16, #tpu.memory_space<vmem>>, vector<1x256x128xbf16>
      %21 = vector.shape_cast %20 : vector<1x256x128xbf16> to vector<256x128xbf16>
      %c0_20 = arith.constant 0 : index
      %c0_21 = arith.constant 0 : index
      %22 = vector.load %arg9[%c0_20, %c0_21] : memref<128x128xbf16, #tpu.memory_space<vmem>>, vector<128x128xbf16>
      %cst_22 = arith.constant dense<0.000000e+00> : vector<256x128xf32>
      %23 = tpu.matmul %21, %22, %cst_22 {dimension_numbers = #tpu.dot_dimension_numbers<[1], [0], [0], [1], [0, 0, 1, 1], [], []>} : vector<256x128xbf16>, vector<128x128xbf16>, vector<256x128xf32> -> vector<256x128xf32>
      %c0_23 = arith.constant 0 : index
      %c0_24 = arith.constant 0 : index
      %24 = vector.load %arg10[%c0_23, %c0_24] : memref<1x128xf32, #tpu.memory_space<vmem>>, vector<1x128xf32>
      %25 = vector.broadcast %24 : vector<1x128xf32> to vector<256x128xf32>
      %26 = arith.mulf %23, %25 : vector<256x128xf32>
      %27 = arith.addf %19, %26 : vector<256x128xf32>
      %c0_25 = arith.constant 0 : index
      %c0_26 = arith.constant 0 : index
      %28 = vector.load %arg11[%c0_25, %c0_26] : memref<1x128xf32, #tpu.memory_space<vmem>>, vector<1x128xf32>
      %29 = vector.broadcast %28 : vector<1x128xf32> to vector<256x128xf32>
      %30 = arith.addf %27, %29 : vector<256x128xf32>
      %cst_27 = arith.constant 0.000000e+00 : f32
      %31 = vector.broadcast %cst_27 : f32 to vector<256x128xf32>
      %32 = arith.maximumf %30, %31 : vector<256x128xf32>
      %c0_28 = arith.constant 0 : index
      %c0_29 = arith.constant 0 : index
      %c0_30 = arith.constant 0 : index
      %33 = vector.load %arg12[%c0_28, %c0_29, %c0_30] : memref<1x256x128xf32, #tpu.memory_space<vmem>>, vector<1x256x128xf32>
      %34 = vector.shape_cast %33 : vector<1x256x128xf32> to vector<256x128xf32>
      %35 = vector.shape_cast %32 : vector<256x128xf32> to vector<1x256x128xf32>
      tpu.vector_store %arg12[%c0_28, %c0_29, %c0_30], %35 {strides = array<i32>} : memref<1x256x128xf32, #tpu.memory_space<vmem>>, vector<1x256x128xf32>,
    } else {
    }
    return
  }
  func.func @transform_0(%arg0: i32, %arg1: i32, %arg2: i32, %arg3: i32) -> (i32, i32, i32) {
    %c0_i32 = arith.constant 0 : i32
    return %arg0, %arg1, %arg3 : i32, i32, i32
  }
  func.func @transform_1(%arg0: i32, %arg1: i32, %arg2: i32, %arg3: i32) -> (i32, i32) {
    %c0_i32 = arith.constant 0 : i32
    return %arg3, %arg2 : i32, i32
  }
  func.func @transform_2(%arg0: i32, %arg1: i32, %arg2: i32, %arg3: i32) -> (i32, i32) {
    %c0_i32 = arith.constant 0 : i32
    %c0_i32_0 = arith.constant 0 : i32
    return %c0_i32, %arg2 : i32, i32
  }
  func.func @transform_3(%arg0: i32, %arg1: i32, %arg2: i32, %arg3: i32) -> (i32, i32) {
    %c0_i32 = arith.constant 0 : i32
    %c0_i32_0 = arith.constant 0 : i32
    return %c0_i32, %arg2 : i32, i32
  }
  func.func @transform_4(%arg0: i32, %arg1: i32, %arg2: i32, %arg3: i32) -> (i32, i32, i32) {
    %c0_i32 = arith.constant 0 : i32
    %c0_i32_0 = arith.constant 0 : i32
    return %arg0, %arg1, %c0_i32 : i32, i32, i32
  }
  func.func @transform_5(%arg0: i32, %arg1: i32, %arg2: i32, %arg3: i32) -> (i32, i32) {
    %c0_i32 = arith.constant 0 : i32
    %c0_i32_0 = arith.constant 0 : i32
    return %c0_i32, %arg2 : i32, i32
  }
  func.func @transform_6(%arg0: i32, %arg1: i32, %arg2: i32, %arg3: i32) -> (i32, i32) {
    %c0_i32 = arith.constant 0 : i32
    %c0_i32_0 = arith.constant 0 : i32
    return %c0_i32, %arg2 : i32, i32
  }
  func.func @transform_7(%arg0: i32, %arg1: i32, %arg2: i32, %arg3: i32) -> (i32, i32) {
    %c0_i32 = arith.constant 0 : i32
    %c0_i32_0 = arith.constant 0 : i32
    return %c0_i32, %arg2 : i32, i32
  }
  func.func @transform_8(%arg0: i32, %arg1: i32, %arg2: i32, %arg3: i32) -> (i32, i32, i32) {
    %c0_i32 = arith.constant 0 : i32
    return %arg0, %arg1, %arg2 : i32, i32, i32
  }
}

</mosaic_0001>

<bundles_post_ra>
// kernel: residual_block_forward.2
= control target key start
LH: loop header
LB: loop body
LE: loop exit
PB: predicated region body
PF: predicated region fallthrough
CT: control target
= control target key end

     0   :  { %s1656_s15 = smov 0   ;;  %s1658_s16 = smov 0   ;;  %s1830_s0 = inlined_call_operand.vmem [shape: bf16[2,256,128], index: 0, kind: input, shape index: {}]   ;;  %s1831_s1 = inlined_call_operand.vmem [shape: bf16[128,128], index: 1, kind: input, shape index: {}]   ;;  %s1832_s2 = inlined_call_operand.vmem [shape: f32[1,128], index: 2, kind: input, shape index: {}]   ;;  %s1833_s3 = inlined_call_operand.vmem [shape: f32[1,128], index: 3, kind: input, shape index: {}]   ;;  %s1834_s4 = inlined_call_operand.vmem [shape: bf16[2,256,128], index: 4, kind: output, shape index: {}]  }
   0x1   :  { %s1660_s17 = smov 0  }
   0x2 LB: > { %s40_s18 = sadd.s32 1, %s1625_s16  ;;  %p1277_p0 = scmp.ge.s32.totalorder %s1629_s17, 1  ;;  %s1629_s17 = sphi %s1660_s17, %s14_s17   ;;  %s1625_s16 = sphi %s1658_s16, %s1836_s16   ;;  %s1621_s15 = sphi %s1656_s15, %s1835_s15  }
   0x3   : > { %p42_p1 = scmp.ge.s32.totalorder %s40_s18, 2  ;;  %p236_p2 = scmp.lt.s32.totalorder %s1629_s17, 3 }
   0x5   : > { %s1838_s18 = smov (%p42_p1, %s40_s18), 0  ;;  %p237_p3 = pnand %p1277_p0, %p236_p2 }
   0x6   : > { %p291_p4 = scmp.lt.s32.totalorder (!%p237_p3), %s1621_s15, 1 }
   0x7   : > { %240 = sbr.rel (%p237_p3) target bundleno = 277 (0x115), region = 36 }
   0xc   : > { %v1583_v0 = vld [vmem:[%s1831_s1 + $0x38] sm:$0xff]   ;;  %v1584_v1 = vld [vmem:[%s1831_s1 + $0x30] sm:$0xff]   ;;  %s1840_s15 = smov (!%p291_p4, %s1621_s15), 1  ;;  %v1585_v2 = vld [vmem:[%s1831_s1 + $0x28] sm:$0xff]  }
   0xd   : > { %1495 = vmatprep.subr.bf16.mxu0 %v1583_v0  ;;  %1543 = vmatprep.subr.bf16.mxu1 %v1583_v0  ;;  %s1342_s25 = sshll.u32 %s1840_s15, 7  ;;  %v1586_v3 = vld [vmem:[%s1831_s1 + $0x20] sm:$0xff]   ;;  %v1587_v6 = vld [vmem:[%s1831_s1 + $0x18] sm:$0xff]   ;;  %v1588_v7 = vld [vmem:[%s1831_s1 + $0x10] sm:$0xff]  }
   0xe   : > { %1496 = vmatpush3.bf16.msra.mxu0 %v1583_v0  ;;  %1551 = vmatpush3.bf16.msra.mxu1 %v1583_v0  ;;  %s1691_s28 = scalar_lea.vmem %s1830_s0, %s1342_s25  ;;  %v1589_v8 = vld [vmem:[%s1831_s1 + $0x8] sm:$0xff]   ;;  %v1590_v9 = vld [vmem:[%s1831_s1] sm:$0xff]   ;;  %s1757_s23 = scalar_lea.vmem %s1834_s4, %s1342_s25 }
   0xf   : > { %1497 = vmatprep.subr.bf16.mxu0 %v1584_v1  ;;  %1544 = vmatprep.subr.bf16.mxu1 %v1584_v1  ;;  %v1591_v4 = vld [vmem:[%s1691_s28] sm:$0xff]   ;;  %v1593_v10 = vld [vmem:[%s1691_s28 + $0x8] sm:$0xff]   ;;  %v1595_v12 = vld [vmem:[%s1691_s28 + $0x10] sm:$0xff]  }
  0x10   : > { %v1592_v5 = vld [vmem:[%s1691_s28 + $0x40] sm:$0xff]   ;;  %1511 = vmatprep.mubr.bf16.mxu0 %v1591_v4  ;;  %v1594_v11 = vld [vmem:[%s1691_s28 + $0x48] sm:$0xff]   ;;  %v1596_v13 = vld [vmem:[%s1691_s28 + $0x50] sm:$0xff]  }
  0x11   : > { %1527 = vmatprep.mubr.bf16.mxu1 %v1592_v5  ;;  %v1597_v14 = vld [vmem:[%s1691_s28 + $0x18] sm:$0xff]   ;;  %v1599_v16 = vld [vmem:[%s1691_s28 + $0x20] sm:$0xff]   ;;  %v1601_v18 = vld [vmem:[%s1691_s28 + $0x28] sm:$0xff]  }
  0x12   : > { %1498 = vmatpush3.bf16.msra.mxu0 %v1584_v1  ;;  %1552 = vmatpush3.bf16.msra.mxu1 %v1584_v1  ;;  %v1598_v15 = vld [vmem:[%s1691_s28 + $0x58] sm:$0xff]   ;;  %v1600_v17 = vld [vmem:[%s1691_s28 + $0x60] sm:$0xff]   ;;  %v1602_v19 = vld [vmem:[%s1691_s28 + $0x68] sm:$0xff]  }
  0x13   : > { %1499 = vmatprep.subr.bf16.mxu0 %v1585_v2  ;;  %1545 = vmatprep.subr.bf16.mxu1 %v1585_v2  ;;  %v1603_v20 = vld [vmem:[%s1691_s28 + $0x30] sm:$0xff]   ;;  %v1605_v22 = vld [vmem:[%s1691_s28 + $0x38] sm:$0xff]   ;;  %v1727_v24 = vld [vmem:[%s1832_s2] ss:$0 sm:$0xff] }
  0x14   : > { %v1604_v21 = vld [vmem:[%s1691_s28 + $0x70] sm:$0xff]   ;;  %v1606_v23 = vld [vmem:[%s1691_s28 + $0x78] sm:$0xff]   ;;  %v1734_v29 = vld [vmem:[%s1833_s3] ss:$0 sm:$0xff] }
  0x16   : > { %1500 = vmatpush3.bf16.msra.mxu0 %v1585_v2  ;;  %1553 = vmatpush3.bf16.msra.mxu1 %v1585_v2 }
  0x17   : > { %1501 = vmatprep.subr.bf16.mxu0 %v1586_v3  ;;  %1546 = vmatprep.subr.bf16.mxu1 %v1586_v3 }
  0x1a   : > { %1502 = vmatpush3.bf16.msra.mxu0 %v1586_v3  ;;  %1554 = vmatpush3.bf16.msra.mxu1 %v1586_v3 }
  0x1b   : > { %1503 = vmatprep.subr.bf16.mxu0 %v1587_v6  ;;  %1547 = vmatprep.subr.bf16.mxu1 %v1587_v6 }
  0x1e   : > { %1504 = vmatpush3.bf16.msra.mxu0 %v1587_v6  ;;  %1555 = vmatpush3.bf16.msra.mxu1 %v1587_v6 }
  0x1f   : > { %1505 = vmatprep.subr.bf16.mxu0 %v1588_v7  ;;  %1548 = vmatprep.subr.bf16.mxu1 %v1588_v7 }
  0x22   : > { %1506 = vmatpush3.bf16.msra.mxu0 %v1588_v7  ;;  %1556 = vmatpush3.bf16.msra.mxu1 %v1588_v7 }
  0x23   : > { %1507 = vmatprep.subr.bf16.mxu0 %v1589_v8  ;;  %1549 = vmatprep.subr.bf16.mxu1 %v1589_v8 }
  0x26   : > { %1508 = vmatpush3.bf16.msra.mxu0 %v1589_v8  ;;  %1557 = vmatpush3.bf16.msra.mxu1 %v1589_v8 }
  0x27   : > { %1509 = vmatprep.subr.bf16.mxu0 %v1590_v9  ;;  %1550 = vmatprep.subr.bf16.mxu1 %v1590_v9 }
  0x2a   : > { %1510 = vmatpush3.bf16.msra.mxu0 %v1590_v9  ;;  %1558 = vmatpush3.bf16.msra.mxu1 %v1590_v9 }
  0x2d   : > { %1512 = vmatmul.mubr.bf16.vlgmr.msra.gmra.mxu0 %v1593_v10  ;;  %1528 = vmatmul.mubr.bf16.vlgmr.msra.gmra.mxu1 %v1594_v11 }
  0x2e   : > { %1515 = vmatprep.mubr.bf16.mxu0 %v1595_v12  ;;  %1531 = vmatprep.mubr.bf16.mxu1 %v1596_v13 }
  0x35   : > { %1516 = vmatmul.mubr.bf16.gmra.mxu0 %v1597_v14  ;;  %1532 = vmatmul.mubr.bf16.gmra.mxu1 %v1598_v15 }
  0x36   : > { %1519 = vmatprep.mubr.bf16.mxu0 %v1599_v16  ;;  %1535 = vmatprep.mubr.bf16.mxu1 %v1600_v17 }
  0x3d   : > { %1520 = vmatmul.mubr.bf16.gmra.mxu0 %v1601_v18  ;;  %1536 = vmatmul.mubr.bf16.gmra.mxu1 %v1602_v19 }
  0x3e   : > { %1523 = vmatprep.mubr.bf16.mxu0 %v1603_v20  ;;  %1539 = vmatprep.mubr.bf16.mxu1 %v1604_v21 }
  0x45   : > { %1524 = vmatmul.mubr.bf16.gmra.mxu0 %v1605_v22  ;;  %1540 = vmatmul.mubr.bf16.gmra.mxu1 %v1606_v23 }
  0xed   : > { %v1513_v25 = vpop.f32.mrf.mxu0  ;;  %v1529_v26 = vpop.f32.mrf.mxu1 }
  0xee   : > { %v861_v27 = vmul.f32 %v1513_v25, %v1727_v24  ;;  %v877_v28 = vmul.f32 %v1529_v26, %v1727_v24 }
  0xef   : > { %v626_v30 = vpop.f32.mrf.mxu0  ;;  %v690_v31 = vpop.f32.mrf.mxu1 }
  0xf0   : > { %v859_v32 = vmul.f32 %v1727_v24, %v626_v30  ;;  %v875_v33 = vmul.f32 %v1727_v24, %v690_v31  ;;  %v900_v36 = vadd.f32 %v1734_v29, %v861_v27  ;;  %v916_v37 = vadd.f32 %v1734_v29, %v877_v28 }
  0xf1   : > { %v1514_v34 = vpop.f32.mrf.mxu0  ;;  %v1530_v35 = vpop.f32.mrf.mxu1 }
  0xf2   : > { %v862_v38 = vmul.f32 %v1514_v34, %v1727_v24  ;;  %v878_v39 = vmul.f32 %v1530_v35, %v1727_v24  ;;  %v898_v42 = vadd.f32 %v1734_v29, %v859_v32  ;;  %v914_v43 = vadd.f32 %v1734_v29, %v875_v33 }
  0xf3   : > { %v629_v40 = vpop.f32.mrf.mxu0  ;;  %v693_v41 = vpop.f32.mrf.mxu1  ;;  %v932_v50 = vmax.f32 %v900_v36, 0.0  ;;  %v948_v51 = vmax.f32 %v916_v37, 0.0 }
  0xf4   : > { %v860_v44 = vmul.f32 %v1727_v24, %v629_v40  ;;  %v876_v45 = vmul.f32 %v1727_v24, %v693_v41  ;;  %v901_v46 = vadd.f32 %v1734_v29, %v862_v38  ;;  %v917_v47 = vadd.f32 %v1734_v29, %v878_v39 }
  0xf5   : > { %v1517_v48 = vpop.f32.mrf.mxu0  ;;  %v1533_v49 = vpop.f32.mrf.mxu1  ;;  %v930_v60 = vmax.f32 %v898_v42, 0.0  ;;  %v946_v61 = vmax.f32 %v914_v43, 0.0 }
  0xf6   : > { %v899_v52 = vadd.f32 %v1734_v29, %v860_v44  ;;  %v915_v53 = vadd.f32 %v1734_v29, %v876_v45  ;;  %v933_v54 = vmax.f32 %v901_v46, 0.0  ;;  %v949_v55 = vmax.f32 %v917_v47, 0.0 }
  0xf7   : > { %v865_v56 = vmul.f32 %v1517_v48, %v1727_v24  ;;  %v881_v57 = vmul.f32 %v1533_v49, %v1727_v24  ;;  %v642_v58 = vpop.f32.mrf.mxu0  ;;  %v706_v59 = vpop.f32.mrf.mxu1 }
  0xf8   : > { %v931_v62 = vmax.f32 %v899_v52, 0.0  ;;  %v947_v63 = vmax.f32 %v915_v53, 0.0  ;;  %v1384_v0 = vpack.c.bf16 %v933_v54, %v932_v50  ;;  %v1424_v1 = vpack.c.bf16 %v949_v55, %v948_v51 }
  0xf9   : > { %v863_v2 = vmul.f32 %v1727_v24, %v642_v58  ;;  %v879_v3 = vmul.f32 %v1727_v24, %v706_v59  ;;  %v1518_v4 = vpop.f32.mrf.mxu0  ;;  %v1534_v5 = vpop.f32.mrf.mxu1  ;;  %v904_v8 = vadd.f32 %v1734_v29, %v865_v56  ;;  %v920_v9 = vadd.f32 %v1734_v29, %v881_v57 }
  0xfa   : > { %v1379_v6 = vpack.c.bf16 %v931_v62, %v930_v60  ;;  %v1419_v7 = vpack.c.bf16 %v947_v63, %v946_v61  ;;  %1456 = vst [vmem:[%s1757_s23 + $0x8] sm:$0xff] %v1384_v0   ;;  %1464 = vst [vmem:[%s1757_s23 + $0x48] sm:$0xff] %v1424_v1   ;;  %v866_v10 = vmul.f32 %v1518_v4, %v1727_v24 }
  0xfb   : > { %v882_v11 = vmul.f32 %v1534_v5, %v1727_v24  ;;  %v645_v12 = vpop.f32.mrf.mxu0  ;;  %v709_v13 = vpop.f32.mrf.mxu1  ;;  %v902_v14 = vadd.f32 %v1734_v29, %v863_v2  ;;  %v918_v15 = vadd.f32 %v1734_v29, %v879_v3  ;;  %v936_v27 = vmax.f32 %v904_v8, 0.0 }
  0xfc   : > { %1380 = vst [vmem:[%s1757_s23] sm:$0xff] %v1379_v6   ;;  %1463 = vst [vmem:[%s1757_s23 + $0x40] sm:$0xff] %v1419_v7   ;;  %v864_v16 = vmul.f32 %v1727_v24, %v645_v12  ;;  %v880_v17 = vmul.f32 %v1727_v24, %v709_v13  ;;  %v905_v18 = vadd.f32 %v1734_v29, %v866_v10  ;;  %v952_v28 = vmax.f32 %v920_v9, 0.0 }
  0xfd   : > { %v921_v19 = vadd.f32 %v1734_v29, %v882_v11  ;;  %v1521_v20 = vpop.f32.mrf.mxu0  ;;  %v1537_v21 = vpop.f32.mrf.mxu1  ;;  %v934_v34 = vmax.f32 %v902_v14, 0.0  ;;  %v950_v35 = vmax.f32 %v918_v15, 0.0 }
  0xfe   : > { %v903_v22 = vadd.f32 %v1734_v29, %v864_v16  ;;  %v919_v23 = vadd.f32 %v1734_v29, %v880_v17  ;;  %v869_v25 = vmul.f32 %v1521_v20, %v1727_v24  ;;  %v885_v26 = vmul.f32 %v1537_v21, %v1727_v24 }
  0xff   : > { %v937_v30 = vmax.f32 %v905_v18, 0.0  ;;  %v953_v31 = vmax.f32 %v921_v19, 0.0  ;;  %v658_v32 = vpop.f32.mrf.mxu0  ;;  %v722_v33 = vpop.f32.mrf.mxu1 }
 0x100   : > { %v935_v36 = vmax.f32 %v903_v22, 0.0  ;;  %v951_v37 = vmax.f32 %v919_v23, 0.0  ;;  %v867_v40 = vmul.f32 %v1727_v24, %v658_v32  ;;  %v883_v41 = vmul.f32 %v1727_v24, %v722_v33 }
 0x101   : > { %v1394_v38 = vpack.c.bf16 %v937_v30, %v936_v27  ;;  %v1434_v39 = vpack.c.bf16 %v953_v31, %v952_v28  ;;  %v1522_v42 = vpop.f32.mrf.mxu0  ;;  %v1538_v43 = vpop.f32.mrf.mxu1  ;;  %v908_v46 = vadd.f32 %v1734_v29, %v869_v25  ;;  %v924_v47 = vadd.f32 %v1734_v29, %v885_v26 }
 0x102   : > { %v1389_v44 = vpack.c.bf16 %v935_v36, %v934_v34  ;;  %v1429_v45 = vpack.c.bf16 %v951_v37, %v950_v35  ;;  %v870_v48 = vmul.f32 %v1522_v42, %v1727_v24  ;;  %v886_v49 = vmul.f32 %v1538_v43, %v1727_v24 }
 0x103   : > { %1458 = vst [vmem:[%s1757_s23 + $0x18] sm:$0xff] %v1394_v38   ;;  %1466 = vst [vmem:[%s1757_s23 + $0x58] sm:$0xff] %v1434_v39   ;;  %v661_v50 = vpop.f32.mrf.mxu0  ;;  %v725_v51 = vpop.f32.mrf.mxu1  ;;  %v906_v52 = vadd.f32 %v1734_v29, %v867_v40  ;;  %v922_v53 = vadd.f32 %v1734_v29, %v883_v41  ;;  %v940_v60 = vmax.f32 %v908_v46, 0.0  ;;  %v956_v61 = vmax.f32 %v924_v47, 0.0 }
 0x104   : > { %1457 = vst [vmem:[%s1757_s23 + $0x10] sm:$0xff] %v1389_v44   ;;  %1465 = vst [vmem:[%s1757_s23 + $0x50] sm:$0xff] %v1429_v45   ;;  %v868_v54 = vmul.f32 %v1727_v24, %v661_v50  ;;  %v884_v55 = vmul.f32 %v1727_v24, %v725_v51  ;;  %v909_v56 = vadd.f32 %v1734_v29, %v870_v48 }
 0x105   : > { %v925_v57 = vadd.f32 %v1734_v29, %v886_v49  ;;  %v1525_v58 = vpop.f32.mrf.mxu0  ;;  %v1541_v59 = vpop.f32.mrf.mxu1  ;;  %v938_v6 = vmax.f32 %v906_v52, 0.0  ;;  %v954_v7 = vmax.f32 %v922_v53, 0.0 }
 0x106   : > { %v907_v62 = vadd.f32 %v1734_v29, %v868_v54  ;;  %v923_v63 = vadd.f32 %v1734_v29, %v884_v55  ;;  %v941_v0 = vmax.f32 %v909_v56, 0.0  ;;  %v873_v2 = vmul.f32 %v1525_v58, %v1727_v24 }
 0x107   : > { %v957_v1 = vmax.f32 %v925_v57, 0.0  ;;  %v889_v3 = vmul.f32 %v1541_v59, %v1727_v24  ;;  %v674_v4 = vpop.f32.mrf.mxu0  ;;  %v738_v5 = vpop.f32.mrf.mxu1 }
 0x108   : > { %v939_v8 = vmax.f32 %v907_v62, 0.0  ;;  %v955_v9 = vmax.f32 %v923_v63, 0.0  ;;  %v1404_v10 = vpack.c.bf16 %v941_v0, %v940_v60  ;;  %v871_v12 = vmul.f32 %v1727_v24, %v674_v4 }
 0x109   : > { %v1444_v11 = vpack.c.bf16 %v957_v1, %v956_v61  ;;  %v887_v13 = vmul.f32 %v1727_v24, %v738_v5  ;;  %v1526_v14 = vpop.f32.mrf.mxu0  ;;  %v1542_v15 = vpop.f32.mrf.mxu1  ;;  %v912_v18 = vadd.f32 %v1734_v29, %v873_v2  ;;  %v928_v19 = vadd.f32 %v1734_v29, %v889_v3 }
 0x10a   : > { %v1399_v16 = vpack.c.bf16 %v939_v8, %v938_v6  ;;  %v1439_v17 = vpack.c.bf16 %v955_v9, %v954_v7  ;;  %1460 = vst [vmem:[%s1757_s23 + $0x28] sm:$0xff] %v1404_v10   ;;  %v874_v20 = vmul.f32 %v1526_v14, %v1727_v24  ;;  %v890_v21 = vmul.f32 %v1542_v15, %v1727_v24 }
 0x10b   : > { %1468 = vst [vmem:[%s1757_s23 + $0x68] sm:$0xff] %v1444_v11   ;;  %v677_v22 = vpop.f32.mrf.mxu0  ;;  %v741_v23 = vpop.f32.mrf.mxu1  ;;  %v910_v25 = vadd.f32 %v1734_v29, %v871_v12  ;;  %v926_v26 = vadd.f32 %v1734_v29, %v887_v13  ;;  %v944_v34 = vmax.f32 %v912_v18, 0.0  ;;  %v960_v35 = vmax.f32 %v928_v19, 0.0 }
 0x10c   : > { %1459 = vst [vmem:[%s1757_s23 + $0x20] sm:$0xff] %v1399_v16   ;;  %1467 = vst [vmem:[%s1757_s23 + $0x60] sm:$0xff] %v1439_v17   ;;  %v872_v27 = vmul.f32 %v1727_v24, %v677_v22  ;;  %v888_v28 = vmul.f32 %v1727_v24, %v741_v23  ;;  %v913_v30 = vadd.f32 %v1734_v29, %v874_v20 }
 0x10d   : > { %v929_v31 = vadd.f32 %v1734_v29, %v890_v21  ;;  %v942_v38 = vmax.f32 %v910_v25, 0.0  ;;  %v958_v39 = vmax.f32 %v926_v26, 0.0 }
 0x10e   : > { %v911_v32 = vadd.f32 %v1734_v29, %v872_v27  ;;  %v927_v33 = vadd.f32 %v1734_v29, %v888_v28  ;;  %v945_v36 = vmax.f32 %v913_v30, 0.0 }
 0x10f   : > { %v961_v37 = vmax.f32 %v929_v31, 0.0 }
 0x110   : > { %v943_v40 = vmax.f32 %v911_v32, 0.0  ;;  %v959_v24 = vmax.f32 %v927_v33, 0.0  ;;  %v1414_v41 = vpack.c.bf16 %v945_v36, %v944_v34 }
 0x111   : > { %v1454_v42 = vpack.c.bf16 %v961_v37, %v960_v35 }
 0x112   : > { %v1409_v43 = vpack.c.bf16 %v943_v40, %v942_v38  ;;  %v1449_v44 = vpack.c.bf16 %v959_v24, %v958_v39  ;;  %1462 = vst [vmem:[%s1757_s23 + $0x38] sm:$0xff] %v1414_v41  }
 0x113   : > { %1470 = vst [vmem:[%s1757_s23 + $0x78] sm:$0xff] %v1454_v42  }
 0x114   : > { %1461 = vst [vmem:[%s1757_s23 + $0x30] sm:$0xff] %v1409_v43   ;;  %1469 = vst [vmem:[%s1757_s23 + $0x70] sm:$0xff] %v1449_v44  }
 0x115 PF: > { %s14_s17 = sadd.s32 1, %s1629_s17   ;;  %s1835_s15 = smov %s1625_s16 }
 0x116   : > { %p11_p5 = scmp.ge.s32.totalorder %s14_s17, 4   ;;  %s1836_s16 = smov %s1838_s18 }
 0x118   :  { %13 = sbr.rel (!%p11_p5) target bundleno = 2 (0x2), region = 83 }

// kernel: residual_block_forward.3
= control target key start
LH: loop header
LB: loop body
LE: loop exit
PB: predicated region body
PF: predicated region fallthrough
CT: control target
= control target key end

     0   :  { %s2210_s27 = smov 0   ;;  %s2212_s28 = smov 0   ;;  %s2516_s0 = inlined_call_operand.vmem [shape: bf16[2,256,128], index: 0, kind: input, shape index: {}]   ;;  %s2517_s1 = inlined_call_operand.vmem [shape: bf16[128,128], index: 1, kind: input, shape index: {}]   ;;  %s2518_s2 = inlined_call_operand.vmem [shape: f32[1,128], index: 2, kind: input, shape index: {}]   ;;  %s2519_s3 = inlined_call_operand.vmem [shape: f32[1,128], index: 3, kind: input, shape index: {}]   ;;  %s2520_s4 = inlined_call_operand.vmem [shape: bf16[2,256,128], index: 4, kind: input, shape index: {}]   ;;  %s2521_s5 = inlined_call_operand.vmem [shape: bf16[128,128], index: 5, kind: input, shape index: {}]   ;;  %s2522_s6 = inlined_call_operand.vmem [shape: f32[1,128], index: 6, kind: input, shape index: {}]   ;;  %s2523_s7 = inlined_call_operand.vmem [shape: f32[1,128], index: 7, kind: input, shape index: {}]   ;;  %s2524_s8 = inlined_call_operand.vmem [shape: f32[2,256,128], index: 8, kind: output, shape index: {}]  }
   0x1   :  { %s2214_s29 = smov 0  }
   0x2 LB: > { %s44_s30 = sadd.s32 1, %s2159_s28  ;;  %p1861_p0 = scmp.ge.s32.totalorder %s2163_s29, 1  ;;  %s2163_s29 = sphi %s2214_s29, %s18_s29   ;;  %s2159_s28 = sphi %s2212_s28, %s2526_s28   ;;  %s2155_s27 = sphi %s2210_s27, %s2525_s27  }
   0x3   : > { %p46_p1 = scmp.ge.s32.totalorder %s44_s30, 2  ;;  %p378_p2 = scmp.lt.s32.totalorder %s2163_s29, 3 }
   0x5   : > { %s2528_s30 = smov (%p46_p1, %s44_s30), 0  ;;  %p379_p3 = pnand %p1861_p0, %p378_p2 }
   0x6   : > { %p460_p4 = scmp.lt.s32.totalorder (!%p379_p3), %s2155_s27, 1 }
   0x7   : > { %382 = sbr.rel (%p379_p3) target bundleno = 311 (0x137), region = 52 }
   0xc   : > { %v2093_v0 = vld [vmem:[%s2517_s1 + $0x38] sm:$0xff]   ;;  %v2095_v2 = vld [vmem:[%s2517_s1 + $0x30] sm:$0xff]   ;;  %v2097_v4 = vld [vmem:[%s2517_s1 + $0x28] sm:$0xff]   ;;  %s2530_s27 = smov (!%p460_p4, %s2155_s27), 1 }
   0xd   : > { %v2094_v1 = vld [vmem:[%s2521_s5 + $0x38] sm:$0xff]   ;;  %1973 = vmatprep.subr.bf16.mxu0 %v2093_v0  ;;  %v2096_v3 = vld [vmem:[%s2521_s5 + $0x30] sm:$0xff]   ;;  %v2098_v5 = vld [vmem:[%s2521_s5 + $0x28] sm:$0xff]   ;;  %s1922_s25 = sshll.u32 %s2530_s27, 7  ;;  %s1924_s20 = sshll.u32 %s2530_s27, 8 }
   0xe   : > { %2021 = vmatprep.subr.bf16.mxu1 %v2094_v1  ;;  %1974 = vmatpush3.bf16.msra.mxu0 %v2093_v0  ;;  %v2099_v6 = vld [vmem:[%s2517_s1 + $0x20] sm:$0xff]   ;;  %v2101_v8 = vld [vmem:[%s2517_s1 + $0x18] sm:$0xff]   ;;  %s2264_s14 = scalar_lea.vmem %s2516_s0, %s1922_s25  ;;  %v2103_v10 = vld [vmem:[%s2517_s1 + $0x10] sm:$0xff]   ;;  %s2272_s19 = scalar_lea.vmem %s2520_s4, %s1922_s25 }
   0xf   : > { %2022 = vmatpush3.bf16.msra.mxu1 %v2094_v1  ;;  %1975 = vmatprep.subr.bf16.mxu0 %v2095_v2  ;;  %v2100_v7 = vld [vmem:[%s2521_s5 + $0x20] sm:$0xff]   ;;  %v2102_v9 = vld [vmem:[%s2521_s5 + $0x18] sm:$0xff]   ;;  %v2104_v11 = vld [vmem:[%s2521_s5 + $0x10] sm:$0xff]   ;;  %s2356_s22 = scalar_lea.vmem %s2524_s8, %s1924_s20 }
  0x10   : > { %2023 = vmatprep.subr.bf16.mxu1 %v2096_v3  ;;  %v2109_v12 = vld [vmem:[%s2264_s14] sm:$0xff]   ;;  %v2105_v14 = vld [vmem:[%s2517_s1 + $0x8] sm:$0xff]   ;;  %v2113_v20 = vld [vmem:[%s2264_s14 + $0x10] sm:$0xff]  }
  0x11   : > { %v2110_v13 = vld [vmem:[%s2272_s19] sm:$0xff]   ;;  %1989 = vmatprep.mubr.bf16.mxu0 %v2109_v12  ;;  %v2106_v15 = vld [vmem:[%s2521_s5 + $0x8] sm:$0xff]   ;;  %v2114_v21 = vld [vmem:[%s2272_s19 + $0x10] sm:$0xff]  }
  0x12   : > { %1976 = vmatpush3.bf16.msra.mxu0 %v2095_v2  ;;  %2037 = vmatprep.mubr.bf16.mxu1 %v2110_v13  ;;  %v2107_v16 = vld [vmem:[%s2517_s1] sm:$0xff]   ;;  %v2111_v18 = vld [vmem:[%s2264_s14 + $0x8] sm:$0xff]   ;;  %v2115_v22 = vld [vmem:[%s2264_s14 + $0x18] sm:$0xff]  }
  0x13   : > { %2024 = vmatpush3.bf16.msra.mxu1 %v2096_v3  ;;  %1977 = vmatprep.subr.bf16.mxu0 %v2097_v4  ;;  %v2108_v17 = vld [vmem:[%s2521_s5] sm:$0xff]   ;;  %v2112_v19 = vld [vmem:[%s2272_s19 + $0x8] sm:$0xff]   ;;  %v2116_v23 = vld [vmem:[%s2272_s19 + $0x18] sm:$0xff]  }
  0x14   : > { %2025 = vmatprep.subr.bf16.mxu1 %v2098_v5  ;;  %v2117_v24 = vld [vmem:[%s2264_s14 + $0x20] sm:$0xff]   ;;  %v2119_v26 = vld [vmem:[%s2264_s14 + $0x28] sm:$0xff]   ;;  %v2121_v28 = vld [vmem:[%s2264_s14 + $0x30] sm:$0xff]  }
  0x15   : > { %v2118_v25 = vld [vmem:[%s2272_s19 + $0x20] sm:$0xff]   ;;  %v2120_v27 = vld [vmem:[%s2272_s19 + $0x28] sm:$0xff]   ;;  %v2122_v29 = vld [vmem:[%s2272_s19 + $0x30] sm:$0xff]  }
  0x16   : > { %1978 = vmatpush3.bf16.msra.mxu0 %v2097_v4  ;;  %v2123_v30 = vld [vmem:[%s2264_s14 + $0x38] sm:$0xff]   ;;  %v2125_v32 = vld [vmem:[%s2264_s14 + $0x40] sm:$0xff]   ;;  %v2127_v34 = vld [vmem:[%s2264_s14 + $0x48] sm:$0xff]  }
  0x17   : > { %2026 = vmatpush3.bf16.msra.mxu1 %v2098_v5  ;;  %1979 = vmatprep.subr.bf16.mxu0 %v2099_v6  ;;  %v2124_v31 = vld [vmem:[%s2272_s19 + $0x38] sm:$0xff]   ;;  %v2126_v33 = vld [vmem:[%s2272_s19 + $0x40] sm:$0xff]   ;;  %v2128_v35 = vld [vmem:[%s2272_s19 + $0x48] sm:$0xff]  }
  0x18   : > { %2027 = vmatprep.subr.bf16.mxu1 %v2100_v7  ;;  %v2129_v36 = vld [vmem:[%s2264_s14 + $0x50] sm:$0xff]   ;;  %v2131_v38 = vld [vmem:[%s2264_s14 + $0x58] sm:$0xff]   ;;  %v2133_v40 = vld [vmem:[%s2264_s14 + $0x60] sm:$0xff]  }
  0x19   : > { %v2130_v37 = vld [vmem:[%s2272_s19 + $0x50] sm:$0xff]   ;;  %v2132_v39 = vld [vmem:[%s2272_s19 + $0x58] sm:$0xff]   ;;  %v2134_v41 = vld [vmem:[%s2272_s19 + $0x60] sm:$0xff]  }
  0x1a   : > { %1980 = vmatpush3.bf16.msra.mxu0 %v2099_v6  ;;  %v2135_v42 = vld [vmem:[%s2264_s14 + $0x68] sm:$0xff]   ;;  %v2137_v44 = vld [vmem:[%s2264_s14 + $0x70] sm:$0xff]   ;;  %v2139_v46 = vld [vmem:[%s2264_s14 + $0x78] sm:$0xff]  }
  0x1b   : > { %2028 = vmatpush3.bf16.msra.mxu1 %v2100_v7  ;;  %1981 = vmatprep.subr.bf16.mxu0 %v2101_v8  ;;  %v2136_v43 = vld [vmem:[%s2272_s19 + $0x68] sm:$0xff]   ;;  %v2138_v45 = vld [vmem:[%s2272_s19 + $0x70] sm:$0xff]   ;;  %v2140_v47 = vld [vmem:[%s2272_s19 + $0x78] sm:$0xff]  }
  0x1c   : > { %2029 = vmatprep.subr.bf16.mxu1 %v2102_v9  ;;  %v2324_v48 = vld [vmem:[%s2518_s2] ss:$0 sm:$0xff] }
  0x1d   : > { %v2329_v49 = vld [vmem:[%s2522_s6] ss:$0 sm:$0xff] }
  0x1e   : > { %1982 = vmatpush3.bf16.msra.mxu0 %v2101_v8  ;;  %v2334_v51 = vld [vmem:[%s2519_s3] ss:$0 sm:$0xff] }
  0x1f   : > { %2030 = vmatpush3.bf16.msra.mxu1 %v2102_v9  ;;  %1983 = vmatprep.subr.bf16.mxu0 %v2103_v10  ;;  %v2343_v59 = vld [vmem:[%s2523_s7] ss:$0 sm:$0xff] }
  0x20   : > { %2031 = vmatprep.subr.bf16.mxu1 %v2104_v11 }
  0x22   : > { %1984 = vmatpush3.bf16.msra.mxu0 %v2103_v10 }
  0x23   : > { %2032 = vmatpush3.bf16.msra.mxu1 %v2104_v11  ;;  %1985 = vmatprep.subr.bf16.mxu0 %v2105_v14 }
  0x24   : > { %2033 = vmatprep.subr.bf16.mxu1 %v2106_v15 }
  0x26   : > { %1986 = vmatpush3.bf16.msra.mxu0 %v2105_v14 }
  0x27   : > { %2034 = vmatpush3.bf16.msra.mxu1 %v2106_v15  ;;  %1987 = vmatprep.subr.bf16.mxu0 %v2107_v16 }
  0x28   : > { %2035 = vmatprep.subr.bf16.mxu1 %v2108_v17 }
  0x2a   : > { %1988 = vmatpush3.bf16.msra.mxu0 %v2107_v16 }
  0x2b   : > { %2036 = vmatpush3.bf16.msra.mxu1 %v2108_v17 }
  0x2d   : > { %1990 = vmatmul.mubr.bf16.vlgmr.msra.gmra.mxu0 %v2111_v18 }
  0x2e   : > { %2038 = vmatmul.mubr.bf16.vlgmr.msra.gmra.mxu1 %v2112_v19  ;;  %1993 = vmatprep.mubr.bf16.mxu0 %v2113_v20 }
  0x2f   : > { %2041 = vmatprep.mubr.bf16.mxu1 %v2114_v21 }
  0x35   : > { %1994 = vmatmul.mubr.bf16.gmra.mxu0 %v2115_v22 }
  0x36   : > { %2042 = vmatmul.mubr.bf16.gmra.mxu1 %v2116_v23  ;;  %1997 = vmatprep.mubr.bf16.mxu0 %v2117_v24 }
  0x37   : > { %2045 = vmatprep.mubr.bf16.mxu1 %v2118_v25 }
  0x3d   : > { %1998 = vmatmul.mubr.bf16.gmra.mxu0 %v2119_v26 }
  0x3e   : > { %2046 = vmatmul.mubr.bf16.gmra.mxu1 %v2120_v27  ;;  %2001 = vmatprep.mubr.bf16.mxu0 %v2121_v28 }
  0x3f   : > { %2049 = vmatprep.mubr.bf16.mxu1 %v2122_v29 }
  0x45   : > { %2002 = vmatmul.mubr.bf16.gmra.mxu0 %v2123_v30 }
  0x46   : > { %2050 = vmatmul.mubr.bf16.gmra.mxu1 %v2124_v31  ;;  %2005 = vmatprep.mubr.bf16.mxu0 %v2125_v32 }
  0x47   : > { %2053 = vmatprep.mubr.bf16.mxu1 %v2126_v33 }
  0x4d   : > { %2006 = vmatmul.mubr.bf16.gmra.mxu0 %v2127_v34 }
  0x4e   : > { %2054 = vmatmul.mubr.bf16.gmra.mxu1 %v2128_v35  ;;  %2009 = vmatprep.mubr.bf16.mxu0 %v2129_v36 }
  0x4f   : > { %2057 = vmatprep.mubr.bf16.mxu1 %v2130_v37 }
  0x55   : > { %2010 = vmatmul.mubr.bf16.gmra.mxu0 %v2131_v38 }
  0x56   : > { %2058 = vmatmul.mubr.bf16.gmra.mxu1 %v2132_v39  ;;  %2013 = vmatprep.mubr.bf16.mxu0 %v2133_v40 }
  0x57   : > { %2061 = vmatprep.mubr.bf16.mxu1 %v2134_v41 }
  0x5d   : > { %2014 = vmatmul.mubr.bf16.gmra.mxu0 %v2135_v42 }
  0x5e   : > { %2062 = vmatmul.mubr.bf16.gmra.mxu1 %v2136_v43  ;;  %2017 = vmatprep.mubr.bf16.mxu0 %v2137_v44 }
  0x5f   : > { %2065 = vmatprep.mubr.bf16.mxu1 %v2138_v45 }
  0x65   : > { %2018 = vmatmul.mubr.bf16.gmra.mxu0 %v2139_v46 }
  0x66   : > { %2066 = vmatmul.mubr.bf16.gmra.mxu1 %v2140_v47 }
  0xed   : > { %v1991_v50 = vpop.f32.mrf.mxu0 }
  0xee   : > { %v1050_v52 = vmul.f32 %v1991_v50, %v2324_v48  ;;  %v2039_v53 = vpop.f32.mrf.mxu1 }
  0xef   : > { %v1481_v54 = vmul.f32 %v2039_v53, %v2329_v49  ;;  %v815_v55 = vpop.f32.mrf.mxu0 }
  0xf0   : > { %v1089_v56 = vadd.f32 %v2334_v51, %v1050_v52  ;;  %v1048_v57 = vmul.f32 %v2324_v48, %v815_v55  ;;  %v1345_v58 = vpop.f32.mrf.mxu1 }
  0xf1   : > { %v1992_v60 = vpop.f32.mrf.mxu0  ;;  %v1479_v63 = vmul.f32 %v2329_v49, %v1345_v58 }
  0xf2   : > { %v1513_v61 = vadd.f32 %v1481_v54, %v1089_v56  ;;  %v1087_v62 = vadd.f32 %v2334_v51, %v1048_v57  ;;  %v1051_v0 = vmul.f32 %v1992_v60, %v2324_v48  ;;  %v2040_v1 = vpop.f32.mrf.mxu1 }
  0xf3   : > { %v1482_v2 = vmul.f32 %v2040_v1, %v2329_v49  ;;  %v818_v3 = vpop.f32.mrf.mxu0 }
  0xf4   : > { %v1552_v4 = vadd.f32 %v2343_v59, %v1513_v61  ;;  %v1511_v5 = vadd.f32 %v1479_v63, %v1087_v62  ;;  %v1090_v6 = vadd.f32 %v2334_v51, %v1051_v0  ;;  %v1049_v7 = vmul.f32 %v2324_v48, %v818_v3  ;;  %v1348_v8 = vpop.f32.mrf.mxu1 }
  0xf5   : > { %v1480_v9 = vmul.f32 %v2329_v49, %v1348_v8  ;;  %v1995_v10 = vpop.f32.mrf.mxu0 }
  0xf6   : > { %v1584_v11 = vmax.f32 %v1552_v4, 0.0  ;;  %v1550_v12 = vadd.f32 %v2343_v59, %v1511_v5  ;;  %v1514_v13 = vadd.f32 %v1482_v2, %v1090_v6  ;;  %v1088_v14 = vadd.f32 %v2334_v51, %v1049_v7  ;;  %v2043_v15 = vpop.f32.mrf.mxu1 }
  0xf7   : > { %v1054_v16 = vmul.f32 %v1995_v10, %v2324_v48  ;;  %v1485_v17 = vmul.f32 %v2043_v15, %v2329_v49  ;;  %v831_v18 = vpop.f32.mrf.mxu0 }
  0xf8   : > { %1616 = vst [vmem:[%s2356_s22 + $0x10] sm:$0xff] %v1584_v11  ;;  %v1582_v19 = vmax.f32 %v1550_v12, 0.0  ;;  %v1553_v20 = vadd.f32 %v2343_v59, %v1514_v13  ;;  %v1512_v21 = vadd.f32 %v1480_v9, %v1088_v14  ;;  %v1052_v22 = vmul.f32 %v2324_v48, %v831_v18  ;;  %v1361_v23 = vpop.f32.mrf.mxu1 }
  0xf9   : > { %v1093_v24 = vadd.f32 %v2334_v51, %v1054_v16  ;;  %v1483_v25 = vmul.f32 %v2329_v49, %v1361_v23  ;;  %v1996_v26 = vpop.f32.mrf.mxu0 }
  0xfa   : > { %1614 = vst [vmem:[%s2356_s22] sm:$0xff] %v1582_v19  ;;  %v1585_v27 = vmax.f32 %v1553_v20, 0.0  ;;  %v1551_v28 = vadd.f32 %v2343_v59, %v1512_v21  ;;  %v1091_v29 = vadd.f32 %v2334_v51, %v1052_v22  ;;  %v1055_v30 = vmul.f32 %v1996_v26, %v2324_v48  ;;  %v2044_v31 = vpop.f32.mrf.mxu1 }
  0xfb   : > { %v1517_v32 = vadd.f32 %v1485_v17, %v1093_v24  ;;  %v1486_v33 = vmul.f32 %v2044_v31, %v2329_v49  ;;  %v834_v34 = vpop.f32.mrf.mxu0 }
  0xfc   : > { %1617 = vst [vmem:[%s2356_s22 + $0x18] sm:$0xff] %v1585_v27  ;;  %v1583_v35 = vmax.f32 %v1551_v28, 0.0  ;;  %v1515_v36 = vadd.f32 %v1483_v25, %v1091_v29  ;;  %v1094_v37 = vadd.f32 %v2334_v51, %v1055_v30  ;;  %v1053_v38 = vmul.f32 %v2324_v48, %v834_v34  ;;  %v1364_v39 = vpop.f32.mrf.mxu1 }
  0xfd   : > { %v1556_v40 = vadd.f32 %v2343_v59, %v1517_v32  ;;  %v1484_v41 = vmul.f32 %v2329_v49, %v1364_v39  ;;  %v1999_v42 = vpop.f32.mrf.mxu0 }
  0xfe   : > { %1615 = vst [vmem:[%s2356_s22 + $0x8] sm:$0xff] %v1583_v35  ;;  %v1554_v43 = vadd.f32 %v2343_v59, %v1515_v36  ;;  %v1518_v44 = vadd.f32 %v1486_v33, %v1094_v37  ;;  %v1092_v45 = vadd.f32 %v2334_v51, %v1053_v38  ;;  %v1058_v46 = vmul.f32 %v1999_v42, %v2324_v48  ;;  %v2047_v47 = vpop.f32.mrf.mxu1 }
  0xff   : > { %v1588_v50 = vmax.f32 %v1556_v40, 0.0  ;;  %v1489_v52 = vmul.f32 %v2047_v47, %v2329_v49  ;;  %v847_v53 = vpop.f32.mrf.mxu0 }
 0x100   : > { %v1586_v54 = vmax.f32 %v1554_v43, 0.0  ;;  %v1557_v55 = vadd.f32 %v2343_v59, %v1518_v44  ;;  %v1516_v56 = vadd.f32 %v1484_v41, %v1092_v45  ;;  %v1097_v57 = vadd.f32 %v2334_v51, %v1058_v46  ;;  %v1377_v58 = vpop.f32.mrf.mxu1 }
 0x101   : > { %1620 = vst [vmem:[%s2356_s22 + $0x30] sm:$0xff] %v1588_v50  ;;  %v1056_v60 = vmul.f32 %v2324_v48, %v847_v53  ;;  %v2000_v61 = vpop.f32.mrf.mxu0  ;;  %v1487_v4 = vmul.f32 %v2329_v49, %v1377_v58 }
 0x102   : > { %1618 = vst [vmem:[%s2356_s22 + $0x20] sm:$0xff] %v1586_v54  ;;  %v1589_v62 = vmax.f32 %v1557_v55, 0.0  ;;  %v1555_v63 = vadd.f32 %v2343_v59, %v1516_v56  ;;  %v1521_v0 = vadd.f32 %v1489_v52, %v1097_v57  ;;  %v1059_v1 = vmul.f32 %v2000_v61, %v2324_v48  ;;  %v2048_v2 = vpop.f32.mrf.mxu1 }
 0x103   : > { %v1095_v3 = vadd.f32 %v2334_v51, %v1056_v60  ;;  %v1490_v5 = vmul.f32 %v2048_v2, %v2329_v49  ;;  %v850_v6 = vpop.f32.mrf.mxu0 }
 0x104   : > { %1621 = vst [vmem:[%s2356_s22 + $0x38] sm:$0xff] %v1589_v62  ;;  %v1587_v7 = vmax.f32 %v1555_v63, 0.0  ;;  %v1560_v8 = vadd.f32 %v2343_v59, %v1521_v0  ;;  %v1098_v9 = vadd.f32 %v2334_v51, %v1059_v1  ;;  %v1057_v10 = vmul.f32 %v2324_v48, %v850_v6  ;;  %v1380_v11 = vpop.f32.mrf.mxu1 }
 0x105   : > { %v1519_v12 = vadd.f32 %v1487_v4, %v1095_v3  ;;  %v1488_v13 = vmul.f32 %v2329_v49, %v1380_v11  ;;  %v2003_v14 = vpop.f32.mrf.mxu0 }
 0x106   : > { %1619 = vst [vmem:[%s2356_s22 + $0x28] sm:$0xff] %v1587_v7  ;;  %v1592_v15 = vmax.f32 %v1560_v8, 0.0  ;;  %v1522_v16 = vadd.f32 %v1490_v5, %v1098_v9  ;;  %v1096_v17 = vadd.f32 %v2334_v51, %v1057_v10  ;;  %v1062_v18 = vmul.f32 %v2003_v14, %v2324_v48  ;;  %v2051_v19 = vpop.f32.mrf.mxu1 }
 0x107   : > { %v1558_v20 = vadd.f32 %v2343_v59, %v1519_v12  ;;  %v1493_v21 = vmul.f32 %v2051_v19, %v2329_v49  ;;  %v863_v22 = vpop.f32.mrf.mxu0 }
 0x108   : > { %1624 = vst [vmem:[%s2356_s22 + $0x50] sm:$0xff] %v1592_v15  ;;  %v1561_v23 = vadd.f32 %v2343_v59, %v1522_v16  ;;  %v1520_v24 = vadd.f32 %v1488_v13, %v1096_v17  ;;  %v1101_v25 = vadd.f32 %v2334_v51, %v1062_v18  ;;  %v1060_v26 = vmul.f32 %v2324_v48, %v863_v22  ;;  %v1393_v27 = vpop.f32.mrf.mxu1 }
 0x109   : > { %v1590_v28 = vmax.f32 %v1558_v20, 0.0  ;;  %v1491_v29 = vmul.f32 %v2329_v49, %v1393_v27  ;;  %v2004_v30 = vpop.f32.mrf.mxu0 }
 0x10a   : > { %v1593_v31 = vmax.f32 %v1561_v23, 0.0  ;;  %v1559_v32 = vadd.f32 %v2343_v59, %v1520_v24  ;;  %v1525_v33 = vadd.f32 %v1493_v21, %v1101_v25  ;;  %v1099_v34 = vadd.f32 %v2334_v51, %v1060_v26  ;;  %v2052_v35 = vpop.f32.mrf.mxu1 }
 0x10b   : > { %1622 = vst [vmem:[%s2356_s22 + $0x40] sm:$0xff] %v1590_v28  ;;  %v1063_v36 = vmul.f32 %v2004_v30, %v2324_v48  ;;  %v866_v37 = vpop.f32.mrf.mxu0  ;;  %v1494_v44 = vmul.f32 %v2052_v35, %v2329_v49 }
 0x10c   : > { %1625 = vst [vmem:[%s2356_s22 + $0x58] sm:$0xff] %v1593_v31  ;;  %v1591_v38 = vmax.f32 %v1559_v32, 0.0  ;;  %v1564_v39 = vadd.f32 %v2343_v59, %v1525_v33  ;;  %v1523_v40 = vadd.f32 %v1491_v29, %v1099_v34  ;;  %v1061_v41 = vmul.f32 %v2324_v48, %v866_v37  ;;  %v1396_v42 = vpop.f32.mrf.mxu1 }
 0x10d   : > { %v1102_v43 = vadd.f32 %v2334_v51, %v1063_v36  ;;  %v1492_v45 = vmul.f32 %v2329_v49, %v1396_v42  ;;  %v2007_v46 = vpop.f32.mrf.mxu0 }
 0x10e   : > { %1623 = vst [vmem:[%s2356_s22 + $0x48] sm:$0xff] %v1591_v38  ;;  %v1596_v47 = vmax.f32 %v1564_v39, 0.0  ;;  %v1562_v50 = vadd.f32 %v2343_v59, %v1523_v40  ;;  %v1100_v52 = vadd.f32 %v2334_v51, %v1061_v41  ;;  %v1066_v53 = vmul.f32 %v2007_v46, %v2324_v48  ;;  %v2055_v54 = vpop.f32.mrf.mxu1 }
 0x10f   : > { %v1526_v55 = vadd.f32 %v1494_v44, %v1102_v43  ;;  %v1497_v56 = vmul.f32 %v2055_v54, %v2329_v49  ;;  %v879_v57 = vpop.f32.mrf.mxu0 }
 0x110   : > { %1628 = vst [vmem:[%s2356_s22 + $0x70] sm:$0xff] %v1596_v47  ;;  %v1594_v58 = vmax.f32 %v1562_v50, 0.0  ;;  %v1524_v60 = vadd.f32 %v1492_v45, %v1100_v52  ;;  %v1105_v61 = vadd.f32 %v2334_v51, %v1066_v53  ;;  %v1064_v62 = vmul.f32 %v2324_v48, %v879_v57  ;;  %v1409_v63 = vpop.f32.mrf.mxu1 }
 0x111   : > { %v1565_v0 = vadd.f32 %v2343_v59, %v1526_v55  ;;  %v1495_v1 = vmul.f32 %v2329_v49, %v1409_v63  ;;  %v2008_v2 = vpop.f32.mrf.mxu0 }
 0x112   : > { %1626 = vst [vmem:[%s2356_s22 + $0x60] sm:$0xff] %v1594_v58  ;;  %v1563_v3 = vadd.f32 %v2343_v59, %v1524_v60  ;;  %v1529_v4 = vadd.f32 %v1497_v56, %v1105_v61  ;;  %v1103_v5 = vadd.f32 %v2334_v51, %v1064_v62  ;;  %v1067_v6 = vmul.f32 %v2008_v2, %v2324_v48  ;;  %v2056_v7 = vpop.f32.mrf.mxu1 }
 0x113   : > { %v1597_v8 = vmax.f32 %v1565_v0, 0.0  ;;  %v1498_v9 = vmul.f32 %v2056_v7, %v2329_v49  ;;  %v882_v10 = vpop.f32.mrf.mxu0 }
 0x114   : > { %v1595_v11 = vmax.f32 %v1563_v3, 0.0  ;;  %v1568_v12 = vadd.f32 %v2343_v59, %v1529_v4  ;;  %v1527_v13 = vadd.f32 %v1495_v1, %v1103_v5  ;;  %v1106_v14 = vadd.f32 %v2334_v51, %v1067_v6  ;;  %v1412_v15 = vpop.f32.mrf.mxu1 }
 0x115   : > { %1629 = vst [vmem:[%s2356_s22 + $0x78] sm:$0xff] %v1597_v8  ;;  %v1065_v16 = vmul.f32 %v2324_v48, %v882_v10  ;;  %v2011_v17 = vpop.f32.mrf.mxu0  ;;  %v1496_v24 = vmul.f32 %v2329_v49, %v1412_v15 }
 0x116   : > { %1627 = vst [vmem:[%s2356_s22 + $0x68] sm:$0xff] %v1595_v11  ;;  %v1600_v18 = vmax.f32 %v1568_v12, 0.0  ;;  %v1566_v19 = vadd.f32 %v2343_v59, %v1527_v13  ;;  %v1530_v20 = vadd.f32 %v1498_v9, %v1106_v14  ;;  %v1070_v21 = vmul.f32 %v2011_v17, %v2324_v48  ;;  %v2059_v22 = vpop.f32.mrf.mxu1 }
 0x117   : > { %v1104_v23 = vadd.f32 %v2334_v51, %v1065_v16  ;;  %v1501_v25 = vmul.f32 %v2059_v22, %v2329_v49  ;;  %v895_v26 = vpop.f32.mrf.mxu0 }
 0x118   : > { %1632 = vst [vmem:[%s2356_s22 + $0x90] sm:$0xff] %v1600_v18  ;;  %v1598_v27 = vmax.f32 %v1566_v19, 0.0  ;;  %v1569_v28 = vadd.f32 %v2343_v59, %v1530_v20  ;;  %v1109_v29 = vadd.f32 %v2334_v51, %v1070_v21  ;;  %v1068_v30 = vmul.f32 %v2324_v48, %v895_v26  ;;  %v1425_v31 = vpop.f32.mrf.mxu1 }
 0x119   : > { %v1528_v32 = vadd.f32 %v1496_v24, %v1104_v23  ;;  %v1499_v33 = vmul.f32 %v2329_v49, %v1425_v31  ;;  %v2012_v34 = vpop.f32.mrf.mxu0 }
 0x11a   : > { %1630 = vst [vmem:[%s2356_s22 + $0x80] sm:$0xff] %v1598_v27  ;;  %v1601_v35 = vmax.f32 %v1569_v28, 0.0  ;;  %v1533_v36 = vadd.f32 %v1501_v25, %v1109_v29  ;;  %v1107_v37 = vadd.f32 %v2334_v51, %v1068_v30  ;;  %v1071_v38 = vmul.f32 %v2012_v34, %v2324_v48  ;;  %v2060_v39 = vpop.f32.mrf.mxu1 }
 0x11b   : > { %v1567_v40 = vadd.f32 %v2343_v59, %v1528_v32  ;;  %v1502_v41 = vmul.f32 %v2060_v39, %v2329_v49  ;;  %v898_v42 = vpop.f32.mrf.mxu0 }
 0x11c   : > { %1633 = vst [vmem:[%s2356_s22 + $0x98] sm:$0xff] %v1601_v35  ;;  %v1572_v43 = vadd.f32 %v2343_v59, %v1533_v36  ;;  %v1531_v44 = vadd.f32 %v1499_v33, %v1107_v37  ;;  %v1110_v45 = vadd.f32 %v2334_v51, %v1071_v38  ;;  %v1069_v46 = vmul.f32 %v2324_v48, %v898_v42  ;;  %v1428_v47 = vpop.f32.mrf.mxu1 }
 0x11d   : > { %v1599_v50 = vmax.f32 %v1567_v40, 0.0  ;;  %v1500_v52 = vmul.f32 %v2329_v49, %v1428_v47  ;;  %v2015_v53 = vpop.f32.mrf.mxu0 }
 0x11e   : > { %v1604_v54 = vmax.f32 %v1572_v43, 0.0  ;;  %v1570_v55 = vadd.f32 %v2343_v59, %v1531_v44  ;;  %v1534_v56 = vadd.f32 %v1502_v41, %v1110_v45  ;;  %v1108_v57 = vadd.f32 %v2334_v51, %v1069_v46  ;;  %v2063_v58 = vpop.f32.mrf.mxu1 }
 0x11f   : > { %1631 = vst [vmem:[%s2356_s22 + $0x88] sm:$0xff] %v1599_v50  ;;  %v1074_v60 = vmul.f32 %v2015_v53, %v2324_v48  ;;  %v1505_v61 = vmul.f32 %v2063_v58, %v2329_v49  ;;  %v911_v62 = vpop.f32.mrf.mxu0 }
 0x120   : > { %1636 = vst [vmem:[%s2356_s22 + $0xb0] sm:$0xff] %v1604_v54  ;;  %v1602_v63 = vmax.f32 %v1570_v55, 0.0  ;;  %v1573_v0 = vadd.f32 %v2343_v59, %v1534_v56  ;;  %v1532_v1 = vadd.f32 %v1500_v52, %v1108_v57  ;;  %v1072_v2 = vmul.f32 %v2324_v48, %v911_v62  ;;  %v1441_v3 = vpop.f32.mrf.mxu1 }
 0x121   : > { %v1113_v4 = vadd.f32 %v2334_v51, %v1074_v60  ;;  %v1503_v5 = vmul.f32 %v2329_v49, %v1441_v3  ;;  %v2016_v6 = vpop.f32.mrf.mxu0 }
 0x122   : > { %1634 = vst [vmem:[%s2356_s22 + $0xa0] sm:$0xff] %v1602_v63  ;;  %v1605_v7 = vmax.f32 %v1573_v0, 0.0  ;;  %v1571_v8 = vadd.f32 %v2343_v59, %v1532_v1  ;;  %v1111_v9 = vadd.f32 %v2334_v51, %v1072_v2  ;;  %v1075_v10 = vmul.f32 %v2016_v6, %v2324_v48  ;;  %v2064_v11 = vpop.f32.mrf.mxu1 }
 0x123   : > { %v1537_v12 = vadd.f32 %v1505_v61, %v1113_v4  ;;  %v1506_v13 = vmul.f32 %v2064_v11, %v2329_v49  ;;  %v914_v14 = vpop.f32.mrf.mxu0 }
 0x124   : > { %1637 = vst [vmem:[%s2356_s22 + $0xb8] sm:$0xff] %v1605_v7  ;;  %v1603_v15 = vmax.f32 %v1571_v8, 0.0  ;;  %v1535_v16 = vadd.f32 %v1503_v5, %v1111_v9  ;;  %v1114_v17 = vadd.f32 %v2334_v51, %v1075_v10  ;;  %v1073_v18 = vmul.f32 %v2324_v48, %v914_v14  ;;  %v1444_v19 = vpop.f32.mrf.mxu1 }
 0x125   : > { %v1576_v20 = vadd.f32 %v2343_v59, %v1537_v12  ;;  %v1504_v21 = vmul.f32 %v2329_v49, %v1444_v19  ;;  %v2019_v22 = vpop.f32.mrf.mxu0 }
 0x126   : > { %1635 = vst [vmem:[%s2356_s22 + $0xa8] sm:$0xff] %v1603_v15  ;;  %v1574_v23 = vadd.f32 %v2343_v59, %v1535_v16  ;;  %v1538_v24 = vadd.f32 %v1506_v13, %v1114_v17  ;;  %v1112_v25 = vadd.f32 %v2334_v51, %v1073_v18  ;;  %v1078_v26 = vmul.f32 %v2019_v22, %v2324_v48  ;;  %v2067_v27 = vpop.f32.mrf.mxu1 }
 0x127   : > { %v1608_v28 = vmax.f32 %v1576_v20, 0.0  ;;  %v1509_v29 = vmul.f32 %v2067_v27, %v2329_v49  ;;  %v927_v30 = vpop.f32.mrf.mxu0 }
 0x128   : > { %v1606_v31 = vmax.f32 %v1574_v23, 0.0  ;;  %v1577_v32 = vadd.f32 %v2343_v59, %v1538_v24  ;;  %v1536_v33 = vadd.f32 %v1504_v21, %v1112_v25  ;;  %v1117_v34 = vadd.f32 %v2334_v51, %v1078_v26  ;;  %v1457_v35 = vpop.f32.mrf.mxu1 }
 0x129   : > { %1640 = vst [vmem:[%s2356_s22 + $0xd0] sm:$0xff] %v1608_v28  ;;  %v1076_v36 = vmul.f32 %v2324_v48, %v927_v30  ;;  %v2020_v37 = vpop.f32.mrf.mxu0  ;;  %v1507_v44 = vmul.f32 %v2329_v49, %v1457_v35 }
 0x12a   : > { %1638 = vst [vmem:[%s2356_s22 + $0xc0] sm:$0xff] %v1606_v31  ;;  %v1609_v38 = vmax.f32 %v1577_v32, 0.0  ;;  %v1575_v39 = vadd.f32 %v2343_v59, %v1536_v33  ;;  %v1541_v40 = vadd.f32 %v1509_v29, %v1117_v34  ;;  %v1079_v41 = vmul.f32 %v2020_v37, %v2324_v48  ;;  %v2068_v42 = vpop.f32.mrf.mxu1 }
 0x12b   : > { %v1115_v43 = vadd.f32 %v2334_v51, %v1076_v36  ;;  %v1510_v45 = vmul.f32 %v2068_v42, %v2329_v49  ;;  %v930_v46 = vpop.f32.mrf.mxu0 }
 0x12c   : > { %1641 = vst [vmem:[%s2356_s22 + $0xd8] sm:$0xff] %v1609_v38  ;;  %v1607_v47 = vmax.f32 %v1575_v39, 0.0  ;;  %v1580_v50 = vadd.f32 %v2343_v59, %v1541_v40  ;;  %v1118_v52 = vadd.f32 %v2334_v51, %v1079_v41  ;;  %v1077_v53 = vmul.f32 %v2324_v48, %v930_v46  ;;  %v1460_v54 = vpop.f32.mrf.mxu1 }
 0x12d   : > { %v1539_v55 = vadd.f32 %v1507_v44, %v1115_v43  ;;  %v1508_v60 = vmul.f32 %v2329_v49, %v1460_v54 }
 0x12e   : > { %1639 = vst [vmem:[%s2356_s22 + $0xc8] sm:$0xff] %v1607_v47  ;;  %v1612_v56 = vmax.f32 %v1580_v50, 0.0  ;;  %v1542_v57 = vadd.f32 %v1510_v45, %v1118_v52  ;;  %v1116_v58 = vadd.f32 %v2334_v51, %v1077_v53 }
 0x12f   : > { %v1578_v61 = vadd.f32 %v2343_v59, %v1539_v55 }
 0x130   : > { %1644 = vst [vmem:[%s2356_s22 + $0xf0] sm:$0xff] %v1612_v56  ;;  %v1581_v62 = vadd.f32 %v2343_v59, %v1542_v57  ;;  %v1540_v63 = vadd.f32 %v1508_v60, %v1116_v58 }
 0x131   : > { %v1610_v0 = vmax.f32 %v1578_v61, 0.0 }
 0x132   : > { %v1613_v1 = vmax.f32 %v1581_v62, 0.0  ;;  %v1579_v48 = vadd.f32 %v2343_v59, %v1540_v63 }
 0x133   : > { %1642 = vst [vmem:[%s2356_s22 + $0xe0] sm:$0xff] %v1610_v0 }
 0x134   : > { %1645 = vst [vmem:[%s2356_s22 + $0xf8] sm:$0xff] %v1613_v1  ;;  %v1611_v2 = vmax.f32 %v1579_v48, 0.0 }
 0x136   : > { %1643 = vst [vmem:[%s2356_s22 + $0xe8] sm:$0xff] %v1611_v2 }
 0x137 PF: > { %s18_s29 = sadd.s32 1, %s2163_s29   ;;  %s2525_s27 = smov %s2159_s28 }
 0x138   : > { %p15_p5 = scmp.ge.s32.totalorder %s18_s29, 4   ;;  %s2526_s28 = smov %s2528_s30 }
 0x13a   :  { %17 = sbr.rel (!%p15_p5) target bundleno = 2 (0x2), region = 111 }

</bundles_post_ra>
